<compile_context>
chip_gen: v5e
topology: v5e:2x2
jax: 0.10.0
libtpu: 0.0.40
codegen_flags: <defaults>
</compile_context>

<pallas_src>
import functools

import jax
import jax.numpy as jnp
from jax import lax
from jax.experimental import pallas as pl
from jax.experimental.pallas import tpu as pltpu


_LANE = 128
# Leading "parallel" grid axis: on v7x (2 TensorCores/chip) Mosaic shards the
# two K halves across cores; on v5e/v6e (1 TC) they simply run sequentially.
_NUM_CORES = 2
# Soft cap on the K tile: beyond this, per-step DMA time already dwarfs the
# ~0.35us/step pipeline overhead and a huge (R, tk) bf16 LHS only risks vreg
# spill.  Drop to 8192-16384 if bundle dumps show LHS spill traffic.
_TK_CAP = 32 * 1024


def _vmem_plan():
    """Generation-aware (w double-buffer budget, scoped-vmem limit) in bytes."""
    try:
        cap = int(pltpu.get_tpu_info().vmem_capacity_bytes)
    except Exception:  # e.g. interpret mode / info unavailable
        cap = 128 * 1024 * 1024
    if cap >= 96 * 1024 * 1024:
        # v5e / v6e: 128 MiB physical VMEM per TensorCore.
        return 48 * 1024 * 1024, 64 * 1024 * 1024
    # v7x: only 64 MiB physical per TensorCore, and each core holds its own
    # double buffer under the 2-core split -> keep headroom.
    return 22 * 1024 * 1024, 48 * 1024 * 1024


def _cvt_chw_flat(img, H, W):
    """(…, H, W, 3) / (H*W, 3) -> flattened CHW row vector (1, 3*H*W)."""
    img = img.reshape(1, H, W, 3).transpose(0, 3, 1, 2)   # (1, 3, H, W)
    return img.reshape(1, -1)


def prepare_dir_clip_weights(w_proj, *, tk=None, num_cores=_NUM_CORES,
                             tk_cap=_TK_CAP):
    """One-time bf16 cast + K zero-pad of the frozen "CLIP" projection.

    The kernel is bound by streaming this weight; casting/padding it per loss
    call would multiply the dominant HBM traffic, so do it once and reuse the
    returned dict across all dir_clip_loss calls.
    """
    P, D = w_proj.shape
    budget, vmem_limit = _vmem_plan()

    p_lane = pl.cdiv(P, _LANE) * _LANE
    per_core = pl.cdiv(pl.cdiv(p_lane, num_cores), _LANE) * _LANE
    if tk is None:
        # Largest 128-multiple whose two bf16 weight buffers fit the budget.
        tk = max(_LANE, ((budget // 2) // (D * 2)) // _LANE * _LANE)
        tk = min(tk, tk_cap)
    assert tk % _LANE == 0
    tk = min(tk, per_core)
    num_k = pl.cdiv(per_core, tk)
    p_pad = num_cores * num_k * tk

    w = w_proj.astype(jnp.bfloat16)
    if p_pad > P:
        # Real zeros (not uninitialized memory): numerically inert in the dot.
        w = jnp.pad(w, ((0, p_pad - P), (0, 0)))

    return dict(w=w, P=P, D=D, p_pad=p_pad, tk=tk, num_k=num_k,
                num_cores=num_cores, vmem_limit=vmem_limit)


def _dir_clip_matmul_kernel(imgs_ref, w_ref, partial_ref):
    """Accumulate one K tile of imgs @ w into this core's (1, R, D) partial."""
    @pl.when(pl.program_id(1) == 0)
    def _():
        partial_ref[...] = jnp.zeros_like(partial_ref)
    partial_ref[...] += jnp.dot(
        imgs_ref[...], w_ref[...],
        preferred_element_type=jnp.float32)[None, :, :]


def _dir_clip_epilogue_kernel(partials_ref, text_ref, out_ref, *,
                              include_coarse):
    feats = jnp.sum(partials_ref[...], axis=0)                    # (R, D) f32
    # L2-normalize image features (get_image_features(norm=True)).
    # TODO(synk): like the torch original there is no epsilon; an exactly-zero
    # projected feature vector would produce NaN via rsqrt(0).
    feats = feats * lax.rsqrt(jnp.sum(feats * feats, axis=-1, keepdims=True))
    src_f = feats[0:1, :]

    text = text_ref[...]                                          # (2, D) f32
    tdir = text[1:2, :] - text[0:1, :]
    tdir = tdir * lax.rsqrt(jnp.sum(tdir * tdir, axis=-1, keepdims=True))

    def directional_loss(tgt_f):
        edit = tgt_f - src_f
        # torch: edit /= (||edit|| + 1e-7); 1 - CosineSimilarity(eps=1e-8).
        # With tdir already unit-norm this simplifies (the 1e-7 cancels) to
        # 1 - <edit, tdir> / max(||edit||, ~1e-8).
        num = jnp.sum(edit * tdir, axis=-1, keepdims=True)
        inv_norm = lax.rsqrt(jnp.maximum(
            jnp.sum(edit * edit, axis=-1, keepdims=True), 1e-16))
        return 1.0 - num * inv_norm                               # (1, 1)

    loss = directional_loss(feats[1:2, :])                        # rgb_fine
    if include_coarse:
        loss = loss + directional_loss(feats[2:3, :])             # rgb_coarse
    out_ref[...] = loss


def dir_clip_loss(src_img, src_text_emb, results, target_text_emb,
                  w_proj=None, *, prepared_w=None, H=50, W=50, tk=None):
    H, W = int(H), int(W)
    if prepared_w is None:
        assert w_proj is not None
        prepared_w = prepare_dir_clip_weights(w_proj, tk=tk)
    pw = prepared_w
    P, D, p_pad = pw['P'], pw['D'], pw['p_pad']
    tk, num_k, nc = pw['tk'], pw['num_k'], pw['num_cores']
    assert P == 3 * H * W

    has_coarse = 'rgb_coarse' in results
    rows = [_cvt_chw_flat(src_img, H, W),
            _cvt_chw_flat(results['rgb_fine'], H, W)]
    if has_coarse:
        rows.append(_cvt_chw_flat(results['rgb_coarse'], H, W))

    # Images are tiny (R*P bf16); per-call cast/pad traffic is negligible
    # compared with the w stream.
    imgs = jnp.concatenate(rows, axis=0).astype(jnp.bfloat16)     # (R, P)
    R = imgs.shape[0]
    if p_pad > P:
        imgs = jnp.pad(imgs, ((0, 0), (0, p_pad - P)))
    text = jnp.concatenate([src_text_emb.reshape(1, D),
                            target_text_emb.reshape(1, D)],
                           axis=0).astype(jnp.float32)            # (2, D)

    imgs_map = lambda c, k: (0, c * num_k + k)
    w_map = lambda c, k: (c * num_k + k, 0)
    # Deeper multi-buffering only pays off when the stream is split into many
    # tiles (hides DMA-start latency at tiny VMEM cost).
    if num_k >= 4:
        imgs_spec = pl.BlockSpec((R, tk), imgs_map,
                                 pipeline_mode=pl.Buffered(3))
        w_spec = pl.BlockSpec((tk, D), w_map, pipeline_mode=pl.Buffered(3))
    else:
        imgs_spec = pl.BlockSpec((R, tk), imgs_map)
        w_spec = pl.BlockSpec((tk, D), w_map)

    cost = pl.CostEstimate(
        flops=2 * R * p_pad * D,
        transcendentals=0,
        bytes_accessed=R * p_pad * 2 + p_pad * D * 2 + nc * R * D * 4)

    partials = pl.pallas_call(
        _dir_clip_matmul_kernel,
        out_shape=jax.ShapeDtypeStruct((nc, R, D), jnp.float32),
        grid_spec=pltpu.PrefetchScalarGridSpec(
            num_scalar_prefetch=0,
            grid=(nc, num_k),
            in_specs=[imgs_spec, w_spec],
            out_specs=pl.BlockSpec((1, R, D), lambda c, k: (c, 0, 0)),
        ),
        compiler_params=pltpu.CompilerParams(
            dimension_semantics=("parallel", "arbitrary"),
            vmem_limit_bytes=pw['vmem_limit']),
        cost_estimate=cost,
    )(imgs, pw['w'])

    # Tiny gridless epilogue: cross-core reduce + normalize + directional loss.
    loss = pl.pallas_call(
        functools.partial(_dir_clip_epilogue_kernel,
                          include_coarse=has_coarse),
        out_shape=jax.ShapeDtypeStruct((1, 1), jnp.float32),
    )(partials, text)

    return loss[0, 0]


def _reference(src_img, src_text_emb, results, target_text_emb, w_proj, H, W):
    """Plain-JAX reference (bf16-quantized inputs, f32 math, torch-faithful)."""
    w = w_proj.astype(jnp.bfloat16).astype(jnp.float32)

    def enc(img):
        flat = _cvt_chw_flat(img, H, W).astype(jnp.bfloat16).astype(jnp.float32)
        f = flat @ w
        return f / jnp.linalg.norm(f, axis=-1, keepdims=True)

    src_f = enc(src_img)
    tdir = (target_text_emb.reshape(1, -1)
            - src_text_emb.reshape(1, -1)).astype(jnp.float32)
    tdir = tdir / jnp.linalg.norm(tdir, axis=-1, keepdims=True)

    def one(tgt):
        edit = enc(tgt) - src_f
        edit = edit / (jnp.linalg.norm(edit, axis=-1, keepdims=True) + 1e-7)
        cos = jnp.sum(edit * tdir, -1) / (
            jnp.maximum(jnp.linalg.norm(edit, axis=-1), 1e-8)
            * jnp.maximum(jnp.linalg.norm(tdir, axis=-1), 1e-8))
        return 1.0 - cos[0]

    loss = one(results['rgb_fine'])
    if 'rgb_coarse' in results:
        loss += one(results['rgb_coarse'])
    return loss


if __name__ == "__main__":
    H = W = 24          # small spatial size (module default is 50x50)
    P = 3 * H * W       # 1728
    D = 128             # synthetic CLIP embedding dim

    key = jax.random.PRNGKey(0)
    k_src, k_fine, k_coarse, k_w, k_ts, k_tt = jax.random.split(key, 6)

    src_img = jax.random.uniform(k_src, (1, H, W, 3), dtype=jnp.float32)
    results = {
        'rgb_fine': jax.random.uniform(k_fine, (H * W, 3), dtype=jnp.float32),
        'rgb_coarse': jax.random.uniform(k_coarse, (H * W, 3), dtype=jnp.float32),
    }
    # TODO(synk): pretrained CLIP ViT image encoder + transformer text encoder
    # are replaced by a linear projection and precomputed text embeddings.
    w_proj = jax.random.normal(k_w, (P, D), dtype=jnp.float32) * 0.02
    src_text_emb = jax.random.normal(k_ts, (1, D), dtype=jnp.float32)
    target_text_emb = jax.random.normal(k_tt, (1, D), dtype=jnp.float32)

    # Prepare the frozen weight ONCE (bf16 cast + pad); reuse across calls.
    prepared = prepare_dir_clip_weights(w_proj)

    # 1) fine + coarse, default tiling (one K tile per core).
    ref = _reference(src_img, src_text_emb, results, target_text_emb,
                     w_proj, H, W)
    loss = dir_clip_loss(src_img, src_text_emb, results, target_text_emb,
                         prepared_w=prepared, H=H, W=W)
    loss = jax.block_until_ready(loss)
    assert jnp.allclose(loss, ref, atol=5e-3, rtol=5e-3), (loss, ref)

    # 2) fine only (no coarse), reusing the same prepared weights.
    results_fine = {'rgb_fine': results['rgb_fine']}
    ref_fine = _reference(src_img, src_text_emb, results_fine,
                          target_text_emb, w_proj, H, W)
    loss_fine = dir_clip_loss(src_img, src_text_emb, results_fine,
                              target_text_emb, prepared_w=prepared, H=H, W=W)
    loss_fine = jax.block_until_ready(loss_fine)
    assert jnp.allclose(loss_fine, ref_fine, atol=5e-3, rtol=5e-3), (
        loss_fine, ref_fine)

    # 3) forced small K tile -> 7 tiles per core: exercises the K accumulation
    #    and the Buffered(3) multi-buffer path.
    prepared_tiled = prepare_dir_clip_weights(w_proj, tk=128)
    loss_tiled = dir_clip_loss(src_img, src_text_emb, results,
                               target_text_emb, prepared_w=prepared_tiled,
                               H=H, W=W)
    loss_tiled = jax.block_until_ready(loss_tiled)
    assert jnp.allclose(loss_tiled, ref, atol=5e-3, rtol=5e-3), (loss_tiled, ref)

    print("KERNEL_OK")
</pallas_src>

<mosaic_0001>
module attributes {stable_mosaic.version = 11 : i64} {
  func.func @_dir_clip_matmul_kernel(%arg0: i32, %arg1: i32, %arg2: memref<3x896xbf16, #tpu.memory_space<vmem>>, %arg3: memref<896x128xbf16, #tpu.memory_space<vmem>>, %arg4: memref<1x3x128xf32, #tpu.memory_space<vmem>>) attributes {dimension_semantics = [#tpu.dimension_semantics<parallel>, #tpu.dimension_semantics<arbitrary>], iteration_bounds = array<i64: 2, 1>, scalar_prefetch = 0 : i64, scratch_operands = 0 : i64, tpu.core_type = #tpu.core_type<tc>, window_params = [{transform_indices = @transform_0, window_bounds = array<i64: 3, 896>}, {transform_indices = @transform_1, window_bounds = array<i64: 896, 128>}, {transform_indices = @transform_2, window_bounds = array<i64: 1, 3, 128>}]} {
    %c0_i32 = arith.constant 0 : i32
    %0 = arith.cmpi eq, %arg1, %c0_i32 : i32
    %1 = arith.extui %0 : i1 to i32
    %c0_i32_0 = arith.constant 0 : i32
    %2 = arith.cmpi ne, %1, %c0_i32_0 : i32
    scf.if %2 {
      %cst_10 = arith.constant 0.000000e+00 : f32
      %10 = vector.broadcast %cst_10 : f32 to vector<1x3x128xf32>
      %c0_11 = arith.constant 0 : index
      %c0_12 = arith.constant 0 : index
      %c0_13 = arith.constant 0 : index
      %11 = vector.load %arg4[%c0_11, %c0_12, %c0_13] : memref<1x3x128xf32, #tpu.memory_space<vmem>>, vector<1x3x128xf32>
      tpu.vector_store %arg4[%c0_11, %c0_12, %c0_13], %10 {strides = array<i32>} : memref<1x3x128xf32, #tpu.memory_space<vmem>>, vector<1x3x128xf32>,
    } else {
    }
    %c0 = arith.constant 0 : index
    %c0_1 = arith.constant 0 : index
    %c0_2 = arith.constant 0 : index
    %3 = vector.load %arg4[%c0, %c0_1, %c0_2] : memref<1x3x128xf32, #tpu.memory_space<vmem>>, vector<1x3x128xf32>
    %c0_3 = arith.constant 0 : index
    %c0_4 = arith.constant 0 : index
    %4 = vector.load %arg2[%c0_3, %c0_4] : memref<3x896xbf16, #tpu.memory_space<vmem>>, vector<3x896xbf16>
    %c0_5 = arith.constant 0 : index
    %c0_6 = arith.constant 0 : index
    %5 = vector.load %arg3[%c0_5, %c0_6] : memref<896x128xbf16, #tpu.memory_space<vmem>>, vector<896x128xbf16>
    %cst = arith.constant dense<0.000000e+00> : vector<3x128xf32>
    %6 = tpu.matmul %4, %5, %cst {dimension_numbers = #tpu.dot_dimension_numbers<[1], [0], [0], [1], [0, 0, 1, 1], [], []>} : vector<3x896xbf16>, vector<896x128xbf16>, vector<3x128xf32> -> vector<3x128xf32>
    %7 = vector.shape_cast %6 : vector<3x128xf32> to vector<1x3x128xf32>
    %8 = arith.addf %3, %7 : vector<1x3x128xf32>
    %c0_7 = arith.constant 0 : index
    %c0_8 = arith.constant 0 : index
    %c0_9 = arith.constant 0 : index
    %9 = vector.load %arg4[%c0_7, %c0_8, %c0_9] : memref<1x3x128xf32, #tpu.memory_space<vmem>>, vector<1x3x128xf32>
    tpu.vector_store %arg4[%c0_7, %c0_8, %c0_9], %8 {strides = array<i32>} : memref<1x3x128xf32, #tpu.memory_space<vmem>>, vector<1x3x128xf32>,
    return
  }
  func.func @transform_0(%arg0: i32, %arg1: i32) -> (i32, i32) {
    %c1_i32 = arith.constant 1 : i32
    %0 = arith.muli %arg0, %c1_i32 : i32
    %1 = arith.addi %0, %arg1 : i32
    %c0_i32 = arith.constant 0 : i32
    %c0_i32_0 = arith.constant 0 : i32
    return %c0_i32, %1 : i32, i32
  }
  func.func @transform_1(%arg0: i32, %arg1: i32) -> (i32, i32) {
    %c1_i32 = arith.constant 1 : i32
    %0 = arith.muli %arg0, %c1_i32 : i32
    %1 = arith.addi %0, %arg1 : i32
    %c0_i32 = arith.constant 0 : i32
    %c0_i32_0 = arith.constant 0 : i32
    return %1, %c0_i32 : i32, i32
  }
  func.func @transform_2(%arg0: i32, %arg1: i32) -> (i32, i32, i32) {
    %c0_i32 = arith.constant 0 : i32
    %c0_i32_0 = arith.constant 0 : i32
    %c0_i32_1 = arith.constant 0 : i32
    return %arg0, %c0_i32, %c0_i32_0 : i32, i32, i32
  }
}

</mosaic_0001>

<bundles_post_ra>
// kernel: tpu_custom_call.1
= control target key start
LH: loop header
LB: loop body
LE: loop exit
PB: predicated region body
PF: predicated region fallthrough
CT: control target
= control target key end

     0   :  { %7 = vsyncpa [#allocation3], 0  ;;  %s1551_s0 = inlined_call_operand.hbm [shape: bf16[3,1792], index: 0, kind: input, shape index: {}]   ;;  %s1552_s1 = inlined_call_operand.hbm [shape: bf16[1792,128], index: 1, kind: input, shape index: {}]   ;;  %s1553_s2 = inlined_call_operand.vmem [shape: f32[2,3,128], index: 2, kind: output, shape index: {}]  }
   0x1   :  { %9 = vsyncpa [#allocation3 + $0x1], 0 }
   0x2   :  { %10 = vsyncpa [#allocation5], 0 }
   0x3   :  { %12 = vsyncpa [#allocation5 + $0x1], 0  ;;  %s1385_s9 = smov 0   ;;  %s1387_s10 = smov 0  }
   0x4   :  { %s1389_s11 = smov 0   ;;  %s1391_s12 = smov 0  }
   0x5   :  { %s1393_s13 = smov 0   ;;  %s1395_s14 = smov 0  }
   0x6 LB: > { %s892_s15 = sadd.s32 4294967295, %s1365_s14   ;;  %s30_s16 = sadd.s32 1, %s1361_s13  ;;  %s1365_s14 = sphi %s1395_s14, %s18_s14   ;;  %s1361_s13 = sphi %s1393_s13, %s1560_s13   ;;  %s1357_s12 = sphi %s1391_s12, %s1559_s12   ;;  %s1353_s11 = sphi %s1389_s11, %s1558_s11   ;;  %s1349_s10 = sphi %s1387_s10, %s1557_s10   ;;  %s1345_s9 = sphi %s1385_s9, %s1556_s9  }
   0x7   : > { %p32_p0 = scmp.ge.s32.totalorder %s30_s16, 2  ;;  %s39_s17 = sadd.s32 1, %s1353_s11 }
   0x8   : > { %p46_p1 = scmp.ne.s32.totalorder %s1353_s11, %s1349_s10  ;;  %p47_p2 = scmp.eq.s32.totalorder %s1365_s14, 0 }
   0x9   : > { %s1562_s16 = smov (%p32_p0, %s30_s16), 0  ;;  %p52_p4 = scmp.ne.s32.totalorder %s1349_s10, %s1345_s9 }
   0xa   : > { %p48_p3 = por %p47_p2, %p46_p1  ;;  %s36_s18 = ssub.s32 %s1361_s13, %s1562_s16 }
   0xb   : > { %p53_p5 = scmp.eq.s32.totalorder %s892_s15, 0  ;;  %p37_p6 = scmp.eq.s32.totalorder %s36_s18, 0 }
   0xc   : > { %p1199_p8 = scmp.lt.s32.totalorder %s1365_s14, 2  ;;  %s1433_s21 = sand.u32 1, %s1353_s11  }
   0xd   : > { %p1424_p7 = por %p53_p5, %p52_p4  ;;  %s1126_s22 = smul.u32 14, %s1361_s13 }
   0xe   : > { %s1430_s20 = scalar_select %p37_p6, %s1353_s11, %s39_s17  }
   0xf   : > { %s1184_s23 = smul.u32 14, %s1433_s21  ;;  %s140_s26 = scalar_lea.hbm %s1551_s0, %s1126_s22 }
  0x10   : > { %p1440_p9 = pnand %p1199_p8, %p48_p3  ;;  %s142_s28 = sshll.u32 %s140_s26, 4  ;;  %s143_s28 = int_to_ptr.hbm [resolvable:$true] %s142_s28 }
  0x11   : > { %s134_s29 = scalar_lea.vmem [#allocation2], %s1184_s23  ;;  %s131_s3 = scalar_lea.sflag [#allocation3], %s1433_s21 }
  0x12   : > { %s144_s30 = sshll.u32 %s134_s29, 4  ;;  %p898_p10 = scmp.ge.s32.totalorder %s1365_s14, 1  ;;  %s145_s30 = int_to_ptr.vmem [resolvable:$true] %s144_s30 }
  0x13   : > { %1195 = dma.hbm_to_vmem [thread:$0]  (!%p1440_p9), %s143_s28, 224, %s145_s30, %s131_s3  }
  0x14   : > { %p172_p11 = scmp.lt.s32.totalorder %s1365_s14, 3  ;;  %s1185_s4 = smul.u32 448, %s1433_s21 }
  0x15   : > { %s1127_s5 = smul.u32 448, %s1361_s13  ;;  %s152_s18 = scalar_lea.sflag [#allocation5], %s1433_s21 }
  0x16   : > { %p173_p12 = pnand %p898_p10, %p172_p11  ;;  %s155_s9 = scalar_lea.vmem [#allocation4], %s1185_s4 }
  0x17   : > { %s161_s8 = scalar_lea.hbm %s1552_s1, %s1127_s5  ;;  %s164_s15 = sshll.u32 %s155_s9, 4  ;;  %s165_s15 = int_to_ptr.vmem [resolvable:$true] %s164_s15 }
  0x18   : > { %s162_s17 = sshll.u32 %s161_s8, 4  ;;  %s1367_s22 = smov 64   ;;  %s163_s17 = int_to_ptr.hbm [resolvable:$true] %s162_s17 }
  0x19   : > { %s1368_s23 = smov 4   ;;  %176 = sbr.rel (%p173_p12) target bundleno = 242 (0xf2), region = 28 }
  0x1a   : > { %1198 = dma.hbm_to_vmem [thread:$0]  (!%p1440_p9), %s163_s17, 7168, %s165_s15, %s152_s18, %s1367_s22, %s1367_s22, %s1368_s23  }
  0x1b   : > { %s178_s24 = sand.u32 (!%p173_p12), 1, %s1349_s10  }
  0x1c   : > { %s1186_s25 = smul.u32 (!%p173_p12), 14, %s178_s24  ;;  %s179_s26 = scalar_lea.sflag (!%p173_p12), [#allocation3], %s178_s24 }
  0x1e   : > { %s1458_s28 = scalar_lea.vmem [#allocation2], %s1186_s25 }
  0x1f   : > { %1336 = dma.done.wait (%p1424_p7), %s179_s26, 224  }
  0x20   : > { %1338 = vsyncadd (%p1424_p7), %s179_s26, 4294967072  ;;  %s1187_s29 = smul.u32 448, %s178_s24  ;;  %s189_s21 = scalar_lea.sflag [#allocation5], %s178_s24 }
  0x22   : > { %s1464_s30 = scalar_lea.vmem [#allocation4], %s1187_s29 }
  0x23   : > { %1340 = dma.done.wait (%p1424_p7), %s189_s21, 7168  }
  0x24   : > { %1342 = vsyncadd (%p1424_p7), %s189_s21, 4294960128  ;;  %v1135_v0 = vld [vmem:[%s1464_s30 + $0x38] sm:$0xff]  ;;  %v1134_v3 = vld [vmem:[%s1464_s30 + $0x30] sm:$0xff]  ;;  %p222_p13 = scmp.lt.s32.totalorder %s1357_s12, 1 }
  0x25   : > { %v1143_v1 = vld [vmem:[%s1464_s30 + $0x78] sm:$0xff]  ;;  %701 = vmatpush.bf16.msra.mxu0 %v1135_v0  ;;  %v1142_v4 = vld [vmem:[%s1464_s30 + $0x70] sm:$0xff]  ;;  %v1133_v7 = vld [vmem:[%s1464_s30 + $0x28] sm:$0xff] }
  0x26   : > { %v1151_v2 = vld [vmem:[%s1464_s30 + $0xb8] sm:$0xff]  ;;  %714 = vmatpush.bf16.msra.mxu1 %v1143_v1  ;;  %v1150_v5 = vld [vmem:[%s1464_s30 + $0xb0] sm:$0xff]  ;;  %v1141_v8 = vld [vmem:[%s1464_s30 + $0x68] sm:$0xff]  ;;  %s1564_s12 = smov (!%p222_p13, %s1357_s12), 1  ;;  %v1369_v1 = vmov 0.0  }
  0x27   : > { %727 = vmatpush.bf16.msra.mxu2 %v1151_v2  ;;  %v1159_v6 = vld [vmem:[%s1464_s30 + $0xf8] sm:$0xff]  ;;  %v1149_v9 = vld [vmem:[%s1464_s30 + $0xa8] sm:$0xff]  ;;  %v1158_v10 = vld [vmem:[%s1464_s30 + $0xf0] sm:$0xff]  ;;  %s899_s19 = sshll.u32 %s1564_s12, 2 }
  0x28   : > { %740 = vmatpush.bf16.msra.mxu3 %v1159_v6  ;;  %v1132_v11 = vld [vmem:[%s1464_s30 + $0x20] sm:$0xff]  ;;  %v1157_v14 = vld [vmem:[%s1464_s30 + $0xe8] sm:$0xff]  ;;  %v1131_v16 = vld [vmem:[%s1464_s30 + $0x18] sm:$0xff]  ;;  %s225_s4 = scalar_lea.vmem %s1553_s2, %s899_s19 }
  0x29   : > { %702 = vmatpush.bf16.msra.mxu0 %v1134_v3  ;;  %v1140_v12 = vld [vmem:[%s1464_s30 + $0x60] sm:$0xff]  ;;  %v1139_v17 = vld [vmem:[%s1464_s30 + $0x58] sm:$0xff]  ;;  %v1130_v20 = vld [vmem:[%s1464_s30 + $0x10] sm:$0xff]  ;;  %230 = vst [vmem:[%s225_s4] sm:$0x7] %v1369_v1 }
  0x2a   : > { %715 = vmatpush.bf16.msra.mxu1 %v1142_v4  ;;  %v1148_v13 = vld [vmem:[%s1464_s30 + $0xa0] sm:$0xff]  ;;  %v1147_v18 = vld [vmem:[%s1464_s30 + $0x98] sm:$0xff]  ;;  %v1138_v21 = vld [vmem:[%s1464_s30 + $0x50] sm:$0xff] }
  0x2b   : > { %728 = vmatpush.bf16.msra.mxu2 %v1150_v5  ;;  %v232_v15 = vld [vmem:[%s1458_s28] sm:$0xff]  ;;  %v233_v28 = vld [vmem:[%s1458_s28 + $0x8] sm:$0x3f] }
  0x2c   : > { %741 = vmatpush.bf16.msra.mxu3 %v1158_v10  ;;  %347 = vst [vmem:[#allocation1] ss:$4 sm:$0xff] %v232_v15  ;;  %v1156_v19 = vld [vmem:[%s1464_s30 + $0xe0] sm:$0xff]  ;;  %v1146_v22 = vld [vmem:[%s1464_s30 + $0x90] sm:$0xff]  ;;  %v1155_v23 = vld [vmem:[%s1464_s30 + $0xd8] sm:$0xff] }
  0x2d   : > { %703 = vmatpush.bf16.msra.mxu0 %v1133_v7  ;;  %v1129_v24 = vld [vmem:[%s1464_s30 + $0x8] sm:$0xff]  ;;  %v1154_v27 = vld [vmem:[%s1464_s30 + $0xd0] sm:$0xff]  ;;  %350 = vst [vmem:[#allocation1 + $0x20] ss:$4 sm:$0xff] %v233_v28  ;;  %v1128_v29 = vld [vmem:[%s1464_s30] sm:$0xff] }
  0x2e   : > { %716 = vmatpush.bf16.msra.mxu1 %v1141_v8  ;;  %v1137_v25 = vld [vmem:[%s1464_s30 + $0x48] sm:$0xff]  ;;  %v1136_v30 = vld [vmem:[%s1464_s30 + $0x40] sm:$0xff]  ;;  %v1167_v32 = vld [vmem:[%s1464_s30 + $0x138] sm:$0xff] }
  0x2f   : > { %729 = vmatpush.bf16.msra.mxu2 %v1149_v9  ;;  %v1145_v26 = vld [vmem:[%s1464_s30 + $0x88] sm:$0xff]  ;;  %v1144_v31 = vld [vmem:[%s1464_s30 + $0x80] sm:$0xff]  ;;  %v1175_v33 = vld [vmem:[%s1464_s30 + $0x178] sm:$0xff] }
  0x30   : > { %742 = vmatpush.bf16.msra.mxu3 %v1157_v14  ;;  %v1183_v34 = vld [vmem:[%s1464_s30 + $0x1b8] sm:$0xff]  ;;  %v1153_v35 = vld [vmem:[%s1464_s30 + $0xc8] sm:$0xff]  ;;  %v1166_v36 = vld [vmem:[%s1464_s30 + $0x130] sm:$0xff] }
  0x31   : > { %704 = vmatpush.bf16.msra.mxu0 %v1132_v11  ;;  %v1174_v40 = vld [vmem:[%s1464_s30 + $0x170] sm:$0xff]  ;;  %v1152_v42 = vld [vmem:[%s1464_s30 + $0xc0] sm:$0xff]  ;;  %v1165_v43 = vld [vmem:[%s1464_s30 + $0x128] sm:$0xff] }
  0x32   : > { %717 = vmatpush.bf16.msra.mxu1 %v1140_v12  ;;  %v1182_v41 = vld [vmem:[%s1464_s30 + $0x1b0] sm:$0xff]  ;;  %v1173_v44 = vld [vmem:[%s1464_s30 + $0x168] sm:$0xff]  ;;  %v1164_v47 = vld [vmem:[%s1464_s30 + $0x120] sm:$0xff] }
  0x33   : > { %730 = vmatpush.bf16.msra.mxu2 %v1148_v13  ;;  %v351_v37 = vld.sshfl [vmem:[#allocation1] sm:$0xff pattern:$0x73625140]  ;;  %v353_v38 = vld.sshfl [vmem:[#allocation1 + $0x10] sm:$0xff pattern:$0x73625140] }
  0x34   : > { %743 = vmatpush.bf16.msra.mxu3 %v1156_v19  ;;  %v352_v39 = vld.sshfl [vmem:[#allocation1 + $0x8] sm:$0xff pattern:$0x73625140]  ;;  %v354_v46 = vld.sshfl [vmem:[#allocation1 + $0x18] sm:$0xff pattern:$0x73625140] }
  0x35   : > { %705 = vmatpush.bf16.msra.mxu0 %v1131_v16  ;;  %v1181_v45 = vld [vmem:[%s1464_s30 + $0x1a8] sm:$0xff]  ;;  %v1172_v48 = vld [vmem:[%s1464_s30 + $0x160] sm:$0xff]  ;;  %v1163_v50 = vld [vmem:[%s1464_s30 + $0x118] sm:$0xff] }
  0x36   : > { %718 = vmatpush.bf16.msra.mxu1 %v1139_v17  ;;  %v1180_v49 = vld [vmem:[%s1464_s30 + $0x1a0] sm:$0xff]  ;;  %v1171_v51 = vld [vmem:[%s1464_s30 + $0x158] sm:$0xff]  ;;  %v1162_v53 = vld [vmem:[%s1464_s30 + $0x110] sm:$0xff] }
  0x37   : > { %731 = vmatpush.bf16.msra.mxu2 %v1147_v18  ;;  %v1179_v52 = vld [vmem:[%s1464_s30 + $0x198] sm:$0xff]  ;;  %v1170_v54 = vld [vmem:[%s1464_s30 + $0x150] sm:$0xff]  ;;  %v1161_v56 = vld [vmem:[%s1464_s30 + $0x108] sm:$0xff] }
  0x38   : > { %744 = vmatpush.bf16.msra.mxu3 %v1155_v23  ;;  %v1178_v55 = vld [vmem:[%s1464_s30 + $0x190] sm:$0xff]  ;;  %v1169_v57 = vld [vmem:[%s1464_s30 + $0x148] sm:$0xff]  ;;  %v1160_v59 = vld [vmem:[%s1464_s30 + $0x100] sm:$0xff] }
  0x39   : > { %706 = vmatpush.bf16.msra.mxu0 %v1130_v20  ;;  %v1177_v58 = vld [vmem:[%s1464_s30 + $0x188] sm:$0xff]  ;;  %v1168_v60 = vld [vmem:[%s1464_s30 + $0x140] sm:$0xff]  ;;  %v231_v17 = vld [vmem:[%s225_s4] sm:$0x7] }
  0x3a   : > { %719 = vmatpush.bf16.msra.mxu1 %v1138_v21  ;;  %v1176_v61 = vld [vmem:[%s1464_s30 + $0x180] sm:$0xff]  ;;  %v357_v0 = vld.sshfl [vmem:[#allocation1 + $0x30] sm:$0xff pattern:$0x73625140] }
  0x3b   : > { %732 = vmatpush.bf16.msra.mxu2 %v1146_v22  ;;  %v355_v62 = vld.sshfl [vmem:[#allocation1 + $0x20] sm:$0xff pattern:$0x73625140]  ;;  %v356_v63 = vld.sshfl [vmem:[#allocation1 + $0x28] sm:$0xff pattern:$0x73625140] }
  0x3c   : > { %745 = vmatpush.bf16.msra.mxu3 %v1154_v27 }
  0x3d   : > { %707 = vmatpush.bf16.msra.mxu0 %v1129_v24 }
  0x3e   : > { %720 = vmatpush.bf16.msra.mxu1 %v1137_v25 }
  0x3f   : > { %733 = vmatpush.bf16.msra.mxu2 %v1145_v26 }
  0x40   : > { %746 = vmatpush.bf16.msra.mxu3 %v1153_v35 }
  0x41   : > { %708 = vmatpush.bf16.msra.mxu0 %v1128_v29 }
  0x42   : > { %721 = vmatpush.bf16.msra.mxu1 %v1136_v30 }
  0x43   : > { %734 = vmatpush.bf16.msra.mxu2 %v1144_v31 }
  0x44   : > { %709 = vmatmul.bf16.vlgmr.msra.gmra.mxu0 %v351_v37  ;;  %747 = vmatpush.bf16.msra.mxu3 %v1152_v42 }
  0x45   : > { %753 = vmatpush.bf16.msrb.mxu0 %v1167_v32  ;;  %722 = vmatmul.bf16.vlgmr.msra.gmra.mxu1 %v352_v39 }
  0x46   : > { %766 = vmatpush.bf16.msrb.mxu1 %v1175_v33  ;;  %735 = vmatmul.bf16.vlgmr.msra.gmra.mxu2 %v353_v38 }
  0x47   : > { %779 = vmatpush.bf16.msrb.mxu2 %v1183_v34  ;;  %748 = vmatmul.bf16.vlgmr.msra.gmra.mxu3 %v354_v46 }
  0x49   : > { %754 = vmatpush.bf16.msrb.mxu0 %v1166_v36 }
  0x4a   : > { %767 = vmatpush.bf16.msrb.mxu1 %v1174_v40 }
  0x4b   : > { %780 = vmatpush.bf16.msrb.mxu2 %v1182_v41 }
  0x4d   : > { %755 = vmatpush.bf16.msrb.mxu0 %v1165_v43 }
  0x4e   : > { %768 = vmatpush.bf16.msrb.mxu1 %v1173_v44 }
  0x4f   : > { %781 = vmatpush.bf16.msrb.mxu2 %v1181_v45 }
  0x51   : > { %756 = vmatpush.bf16.msrb.mxu0 %v1164_v47 }
  0x52   : > { %769 = vmatpush.bf16.msrb.mxu1 %v1172_v48 }
  0x53   : > { %782 = vmatpush.bf16.msrb.mxu2 %v1180_v49 }
  0x55   : > { %757 = vmatpush.bf16.msrb.mxu0 %v1163_v50 }
  0x56   : > { %770 = vmatpush.bf16.msrb.mxu1 %v1171_v51 }
  0x57   : > { %783 = vmatpush.bf16.msrb.mxu2 %v1179_v52 }
  0x59   : > { %758 = vmatpush.bf16.msrb.mxu0 %v1162_v53 }
  0x5a   : > { %771 = vmatpush.bf16.msrb.mxu1 %v1170_v54 }
  0x5b   : > { %784 = vmatpush.bf16.msrb.mxu2 %v1178_v55 }
  0x5d   : > { %759 = vmatpush.bf16.msrb.mxu0 %v1161_v56 }
  0x5e   : > { %772 = vmatpush.bf16.msrb.mxu1 %v1169_v57 }
  0x5f   : > { %785 = vmatpush.bf16.msrb.mxu2 %v1177_v58 }
  0x61   : > { %760 = vmatpush.bf16.msrb.mxu0 %v1160_v59 }
  0x62   : > { %773 = vmatpush.bf16.msrb.mxu1 %v1168_v60 }
  0x63   : > { %786 = vmatpush.bf16.msrb.mxu2 %v1176_v61 }
  0x64   : > { %761 = vmatmul.bf16.vlgmr.msrb.gmra.mxu0 %v355_v62 }
  0x65   : > { %774 = vmatmul.bf16.vlgmr.msrb.gmra.mxu1 %v356_v63 }
  0x66   : > { %787 = vmatmul.bf16.vlgmr.msrb.gmra.mxu2 %v357_v0 }
  0xc1   : > { %v710_v2 = vpop.f32.mrf.mxu0 }
  0xc2   : > { %v723_v3 = vpop.f32.mrf.mxu1 }
  0xc3   : > { %v724_v9 = vadd.f32 %v723_v3, %v710_v2 }
  0xc9   : > { %v736_v4 = vpop.f32.mrf.mxu2  ;;  %v712_v5 = vpop.f32.mrf.mxu0 }
  0xca   : > { %v725_v6 = vpop.f32.mrf.mxu1  ;;  %v749_v7 = vpop.f32.mrf.mxu3  ;;  %v737_v11 = vadd.f32 %v736_v4, %v724_v9 }
  0xcc   : > { %v750_v12 = vadd.f32 %v749_v7, %v737_v11 }
  0xd1   : > { %v738_v8 = vpop.f32.mrf.mxu2 }
  0xd2   : > { %v751_v10 = vpop.f32.mrf.mxu3 }
  0xe1   : > { %v762_v13 = vpop.f32.mrf.mxu0 }
  0xe2   : > { %v775_v14 = vpop.f32.mrf.mxu1  ;;  %v763_v15 = vadd.f32 %v762_v13, %v750_v12 }
  0xe4   : > { %v776_v16 = vadd.f32 %v775_v14, %v763_v15 }
  0xe9   : > { %v788_v18 = vpop.f32.mrf.mxu2  ;;  %v764_v20 = vpop.f32.mrf.mxu0 }
  0xea   : > { %v789_v19 = vadd.f32 %v788_v18, %v776_v16  ;;  %v777_v21 = vpop.f32.mrf.mxu1 }
  0xec   : > { %v792_v22 = vadd.f32 %v789_v19, %v231_v17 }
  0xee   : > { %793 = vst [vmem:[%s225_s4] sm:$0x7] %v792_v22 }
  0xf1   : > { %v790_v23 = vpop.f32.mrf.mxu2 }
  0xf2 PF: > { %s18_s14 = sadd.s32 1, %s1365_s14   ;;  %s1556_s9 = smov %s1349_s10 }
  0xf3   : > { %p15_p0 = scmp.ge.s32.totalorder %s18_s14, 4   ;;  %s1557_s10 = smov %s1353_s11 }
  0xf4   : > { %s1558_s11 = smov %s1430_s20  ;;  %s1559_s12 = smov %s1361_s13 }
  0xf5   : > { %s1560_s13 = smov %s1562_s16  ;;  %17 = sbr.rel (!%p15_p0) target bundleno = 6 (0x6), region = 86 }
  0xfa   :  { %813 = vsyncpa [#allocation3], 1 }
  0xfb   :  { %815 = vsyncpa [#allocation3 + $0x1], 1 }
  0xfc   :  { %816 = vsyncpa [#allocation5], 1 }
  0xfd   :  { %818 = vsyncpa [#allocation5 + $0x1], 1 }

</bundles_post_ra>
